<compile_context>
chip_gen: v5e
topology: v5e:2x2
jax: 0.10.0
libtpu: 0.0.40
codegen_flags: <defaults>
</compile_context>

<pallas_src>
import math

import jax
import jax.numpy as jnp
from jax.experimental import pallas as pl
from jax.experimental.pallas import tpu as pltpu


# ---------------------------------------------------------------------------
# Fused Pallas kernel: whole ARMA4NC forward in one launch
# ---------------------------------------------------------------------------

def make_arma4nc_kernel(num_layers1, num_layers2):
    f32, bf16 = jnp.float32, jnp.bfloat16

    def one_conv(a_norm, x, w0_ref, w_ref, v2_ref, b_ref, s_ref, num_layers):
        # Load + cast weights once (hoisted out of the T loop).
        w0b = w0_ref[...].astype(bf16)        # [Din, K*D]
        wb = w_ref[...].astype(bf16)          # [K*D, K*D] block-diagonal
        v2b = v2_ref[...].astype(bf16)        # [Din, K*D]   (already holds 2*V^T)
        sb = s_ref[...].astype(bf16)          # [K*D, D]     (stacked I / K)

        xb = x.astype(bf16)
        # Residual term for every step: 2 * V_k(init_feats), all K stacks at once.
        vx2 = jnp.dot(xb, v2b, preferred_element_type=f32)          # [N, K*D] f32

        # t = 0 : propagation of init_feats is shared by all stacks -> one matmul.
        h = jnp.dot(a_norm, xb, preferred_element_type=f32)         # [N, Din]
        feats = (jnp.dot(h.astype(bf16), w0b, preferred_element_type=f32)
                 + vx2 + b_ref[0:1, :])                             # [N, K*D]

        # t = 1 .. T-1 : all K stacks batched along lanes (block-diag W).
        for t in range(1, num_layers):
            h = jnp.dot(a_norm, feats.astype(bf16), preferred_element_type=f32)
            feats = (jnp.dot(h.astype(bf16), wb, preferred_element_type=f32)
                     + vx2 + b_ref[t:t + 1, :])

        # Mean over the K stacks (output / K) via one small MXU matmul.
        return jnp.dot(feats.astype(bf16), sb, preferred_element_type=f32)  # [N, D]

    def kernel(adj_ref, nr_ref, nc_ref, x_ref,
               w0_1_ref, w_1_ref, v2_1_ref, b_1_ref, s_1_ref,
               w0_2_ref, w_2_ref, v2_2_ref, b_2_ref, s_2_ref,
               out_ref):
        # Normalized adjacency, built ONCE and reused for all K*T*2 propagation steps.
        a_norm = (nr_ref[...] * adj_ref[...] * nc_ref[...]).astype(bf16)   # [N, N]

        h1 = one_conv(a_norm, x_ref[...],
                      w0_1_ref, w_1_ref, v2_1_ref, b_1_ref, s_1_ref, num_layers1)
        h1 = jnp.maximum(h1, 0.0)     # F.relu; inter-conv nn.Dropout(p=0.0) = identity

        out = one_conv(a_norm, h1,
                       w0_2_ref, w_2_ref, v2_2_ref, b_2_ref, s_2_ref, num_layers2)
        out_ref[...] = out.astype(out_ref.dtype)

    return kernel


# ---------------------------------------------------------------------------
# Parameter init (matches torch shapes / glorot / zeros) and packing
# ---------------------------------------------------------------------------

def glorot_init(key, shape):
    # shape = (out_dim, in_dim), like torch nn.Linear.weight
    stdv = math.sqrt(6.0 / (shape[-2] + shape[-1]))
    return jax.random.uniform(key, shape, jnp.float32, minval=-stdv, maxval=stdv)


def init_arma_conv_params(key, in_dim, out_dim, num_stacks, num_layers):
    keys = jax.random.split(key, 3 * num_stacks)
    w0 = [glorot_init(keys[3 * k + 0], (out_dim, in_dim)) for k in range(num_stacks)]
    w = [glorot_init(keys[3 * k + 1], (out_dim, out_dim)) for k in range(num_stacks)]
    v = [glorot_init(keys[3 * k + 2], (out_dim, in_dim)) for k in range(num_stacks)]
    bias = jnp.zeros((num_stacks, num_layers, 1, out_dim), jnp.float32)  # zeros()
    return dict(w0=w0, w=w, v=v, bias=bias)


def pack_conv_params(params):
    """Batch the K stacks along the output (lane) dimension."""
    K = len(params["w0"])
    dout = params["w0"][0].shape[0]
    T = params["bias"].shape[1]

    # [Din, K*Dout]: concat of W0_k^T along lanes.
    w0_cat = jnp.concatenate([w.T for w in params["w0"]], axis=1)
    # [Din, K*Dout]: concat of (2*V_k)^T  (dropout p=0 -> 2*V(x) residual folded).
    v2_cat = jnp.concatenate([(2.0 * v).T for v in params["v"]], axis=1)
    # [K*Dout, K*Dout]: block-diagonal of W_k^T (per-stack weight for t >= 1).
    w_bd = jnp.zeros((K * dout, K * dout), jnp.float32)
    for k, w in enumerate(params["w"]):
        w_bd = w_bd.at[k * dout:(k + 1) * dout, k * dout:(k + 1) * dout].set(w.T)
    # [T, K*Dout]: per-layer bias rows, k-major along lanes.
    bias_cat = jnp.transpose(params["bias"][:, :, 0, :], (1, 0, 2)).reshape(T, K * dout)
    # [K*Dout, Dout]: stacked identity / K -> mean over stacks via matmul.
    s = jnp.concatenate([jnp.eye(dout, dtype=jnp.float32)] * K, axis=0) / K
    return w0_cat, w_bd, v2_cat, bias_cat, s


# ---------------------------------------------------------------------------
# Forward wrapper: one pallas_call for the whole ARMA4NC forward
# ---------------------------------------------------------------------------

def _vmem_specs(n):
    return [pl.BlockSpec(memory_space=pltpu.MemorySpace.VMEM) for _ in range(n)]


@jax.jit
def arma4nc_forward(adj, x, params1, params2):
    n = adj.shape[0]
    out_dim = params2["w0"][0].shape[0]
    t1 = params1["bias"].shape[1]
    t2 = params2["bias"].shape[1]

    # in-degree normalization (tiny O(N) glue; folded into A_hat inside the kernel)
    degs = jnp.maximum(jnp.sum(adj, axis=1), 1.0)
    norm = jnp.power(degs, -0.5).astype(jnp.float32)
    norm_row = norm.reshape(n, 1)
    norm_col = norm.reshape(1, n)

    p1 = pack_conv_params(params1)
    p2 = pack_conv_params(params2)
    n_inputs = 4 + len(p1) + len(p2)

    return pl.pallas_call(
        make_arma4nc_kernel(t1, t2),
        out_shape=jax.ShapeDtypeStruct((n, out_dim), jnp.float32),
        in_specs=_vmem_specs(n_inputs),
        out_specs=pl.BlockSpec(memory_space=pltpu.MemorySpace.VMEM),
        compiler_params=pltpu.CompilerParams(vmem_limit_bytes=32 * 1024 * 1024),
    )(adj, norm_row, norm_col, x, *p1, *p2)


# ---------------------------------------------------------------------------
# Pure-jnp reference (unbatched, f32, per-stack loops) for a sanity check
# ---------------------------------------------------------------------------

def arma_conv_ref(adj, norm, x, params, apply_relu):
    K = len(params["w0"])
    T = params["bias"].shape[1]
    acc = None
    for k in range(K):
        vx = x @ params["v"][k].T
        feats = x
        for t in range(T):
            W = params["w0"][k] if t == 0 else params["w"][k]
            feats = norm * (adj @ (norm * feats))
            feats = feats @ W.T + 2.0 * vx + params["bias"][k, t]
        acc = feats if acc is None else acc + feats
    out = acc / K
    return jnp.maximum(out, 0.0) if apply_relu else out


def arma4nc_ref(adj, x, params1, params2):
    degs = jnp.maximum(jnp.sum(adj, axis=1), 1.0)
    norm = jnp.power(degs, -0.5)[:, None]
    h = arma_conv_ref(adj, norm, x, params1, apply_relu=True)
    return arma_conv_ref(adj, norm, h, params2, apply_relu=False)


# ---------------------------------------------------------------------------

if __name__ == "__main__":
    N, IN_DIM, HID_DIM, OUT_DIM = 64, 16, 32, 8
    NUM_STACKS, NUM_LAYERS = 2, 2

    key = jax.random.PRNGKey(0)
    k_adj, k_x, k_p1, k_p2 = jax.random.split(key, 4)

    # deterministic random directed graph (dense adjacency, dest-major rows)
    adj = (jax.random.uniform(k_adj, (N, N)) < 0.2).astype(jnp.float32)
    x = jax.random.normal(k_x, (N, IN_DIM), jnp.float32)

    params1 = init_arma_conv_params(k_p1, IN_DIM, HID_DIM, NUM_STACKS, NUM_LAYERS)
    params2 = init_arma_conv_params(k_p2, HID_DIM, OUT_DIM, NUM_STACKS, NUM_LAYERS)

    out = jax.block_until_ready(arma4nc_forward(adj, x, params1, params2))
    assert out.shape == (N, OUT_DIM)

    ref = arma4nc_ref(adj, x, params1, params2)
    # bf16 MXU inputs (f32 accumulation) introduce ~1% relative error vs the f32 reference.
    assert jnp.allclose(out, ref, rtol=5e-2, atol=5e-2), "mismatch vs jnp reference"

    print("KERNEL_OK")
</pallas_src>

<mosaic_0001>
module attributes {stable_mosaic.version = 11 : i64} {
  func.func @kernel(%arg0: memref<64x64xf32, #tpu.memory_space<vmem>>, %arg1: memref<64x1xf32, #tpu.memory_space<vmem>>, %arg2: memref<1x64xf32, #tpu.memory_space<vmem>>, %arg3: memref<64x16xf32, #tpu.memory_space<vmem>>, %arg4: memref<16x64xf32, #tpu.memory_space<vmem>>, %arg5: memref<64x64xf32, #tpu.memory_space<vmem>>, %arg6: memref<16x64xf32, #tpu.memory_space<vmem>>, %arg7: memref<2x64xf32, #tpu.memory_space<vmem>>, %arg8: memref<64x32xf32, #tpu.memory_space<vmem>>, %arg9: memref<32x16xf32, #tpu.memory_space<vmem>>, %arg10: memref<16x16xf32, #tpu.memory_space<vmem>>, %arg11: memref<32x16xf32, #tpu.memory_space<vmem>>, %arg12: memref<2x16xf32, #tpu.memory_space<vmem>>, %arg13: memref<16x8xf32, #tpu.memory_space<vmem>>, %arg14: memref<64x8xf32, #tpu.memory_space<vmem>>) attributes {dimension_semantics = [], scalar_prefetch = 0 : i64, scratch_operands = 0 : i64, tpu.core_type = #tpu.core_type<tc>} {
    %c0 = arith.constant 0 : index
    %c0_0 = arith.constant 0 : index
    %0 = vector.load %arg1[%c0, %c0_0] : memref<64x1xf32, #tpu.memory_space<vmem>>, vector<64x1xf32>
    %c0_1 = arith.constant 0 : index
    %c0_2 = arith.constant 0 : index
    %1 = vector.load %arg0[%c0_1, %c0_2] : memref<64x64xf32, #tpu.memory_space<vmem>>, vector<64x64xf32>
    %2 = vector.broadcast %0 : vector<64x1xf32> to vector<64x64xf32>
    %3 = arith.mulf %2, %1 : vector<64x64xf32>
    %c0_3 = arith.constant 0 : index
    %c0_4 = arith.constant 0 : index
    %4 = vector.load %arg2[%c0_3, %c0_4] : memref<1x64xf32, #tpu.memory_space<vmem>>, vector<1x64xf32>
    %5 = vector.broadcast %4 : vector<1x64xf32> to vector<64x64xf32>
    %6 = arith.mulf %3, %5 : vector<64x64xf32>
    %7 = arith.truncf %6 : vector<64x64xf32> to vector<64x64xbf16>
    %c0_5 = arith.constant 0 : index
    %c0_6 = arith.constant 0 : index
    %8 = vector.load %arg3[%c0_5, %c0_6] : memref<64x16xf32, #tpu.memory_space<vmem>>, vector<64x16xf32>
    %c0_7 = arith.constant 0 : index
    %c0_8 = arith.constant 0 : index
    %9 = vector.load %arg4[%c0_7, %c0_8] : memref<16x64xf32, #tpu.memory_space<vmem>>, vector<16x64xf32>
    %10 = arith.truncf %9 : vector<16x64xf32> to vector<16x64xbf16>
    %c0_9 = arith.constant 0 : index
    %c0_10 = arith.constant 0 : index
    %11 = vector.load %arg5[%c0_9, %c0_10] : memref<64x64xf32, #tpu.memory_space<vmem>>, vector<64x64xf32>
    %12 = arith.truncf %11 : vector<64x64xf32> to vector<64x64xbf16>
    %c0_11 = arith.constant 0 : index
    %c0_12 = arith.constant 0 : index
    %13 = vector.load %arg6[%c0_11, %c0_12] : memref<16x64xf32, #tpu.memory_space<vmem>>, vector<16x64xf32>
    %14 = arith.truncf %13 : vector<16x64xf32> to vector<16x64xbf16>
    %c0_13 = arith.constant 0 : index
    %c0_14 = arith.constant 0 : index
    %15 = vector.load %arg8[%c0_13, %c0_14] : memref<64x32xf32, #tpu.memory_space<vmem>>, vector<64x32xf32>
    %16 = arith.truncf %15 : vector<64x32xf32> to vector<64x32xbf16>
    %17 = arith.truncf %8 : vector<64x16xf32> to vector<64x16xbf16>
    %cst = arith.constant dense<0.000000e+00> : vector<64x64xf32>
    %18 = tpu.matmul %17, %14, %cst {dimension_numbers = #tpu.dot_dimension_numbers<[1], [0], [0], [1], [0, 0, 1, 1], [], []>} : vector<64x16xbf16>, vector<16x64xbf16>, vector<64x64xf32> -> vector<64x64xf32>
    %cst_15 = arith.constant dense<0.000000e+00> : vector<64x16xf32>
    %19 = tpu.matmul %7, %17, %cst_15 {dimension_numbers = #tpu.dot_dimension_numbers<[1], [0], [0], [1], [0, 0, 1, 1], [], []>} : vector<64x64xbf16>, vector<64x16xbf16>, vector<64x16xf32> -> vector<64x16xf32>
    %20 = arith.truncf %19 : vector<64x16xf32> to vector<64x16xbf16>
    %cst_16 = arith.constant dense<0.000000e+00> : vector<64x64xf32>
    %21 = tpu.matmul %20, %10, %cst_16 {dimension_numbers = #tpu.dot_dimension_numbers<[1], [0], [0], [1], [0, 0, 1, 1], [], []>} : vector<64x16xbf16>, vector<16x64xbf16>, vector<64x64xf32> -> vector<64x64xf32>
    %22 = arith.addf %21, %18 : vector<64x64xf32>
    %c0_17 = arith.constant 0 : index
    %c0_18 = arith.constant 0 : index
    %23 = vector.load %arg7[%c0_17, %c0_18] : memref<2x64xf32, #tpu.memory_space<vmem>>, vector<1x64xf32>
    %24 = vector.broadcast %23 : vector<1x64xf32> to vector<64x64xf32>
    %25 = arith.addf %22, %24 : vector<64x64xf32>
    %26 = arith.truncf %25 : vector<64x64xf32> to vector<64x64xbf16>
    %cst_19 = arith.constant dense<0.000000e+00> : vector<64x64xf32>
    %27 = tpu.matmul %7, %26, %cst_19 {dimension_numbers = #tpu.dot_dimension_numbers<[1], [0], [0], [1], [0, 0, 1, 1], [], []>} : vector<64x64xbf16>, vector<64x64xbf16>, vector<64x64xf32> -> vector<64x64xf32>
    %28 = arith.truncf %27 : vector<64x64xf32> to vector<64x64xbf16>
    %cst_20 = arith.constant dense<0.000000e+00> : vector<64x64xf32>
    %29 = tpu.matmul %28, %12, %cst_20 {dimension_numbers = #tpu.dot_dimension_numbers<[1], [0], [0], [1], [0, 0, 1, 1], [], []>} : vector<64x64xbf16>, vector<64x64xbf16>, vector<64x64xf32> -> vector<64x64xf32>
    %30 = arith.addf %29, %18 : vector<64x64xf32>
    %c1 = arith.constant 1 : index
    %c0_21 = arith.constant 0 : index
    %31 = vector.load %arg7[%c1, %c0_21] : memref<2x64xf32, #tpu.memory_space<vmem>>, vector<1x64xf32>
    %32 = vector.broadcast %31 : vector<1x64xf32> to vector<64x64xf32>
    %33 = arith.addf %30, %32 : vector<64x64xf32>
    %34 = arith.truncf %33 : vector<64x64xf32> to vector<64x64xbf16>
    %cst_22 = arith.constant dense<0.000000e+00> : vector<64x32xf32>
    %35 = tpu.matmul %34, %16, %cst_22 {dimension_numbers = #tpu.dot_dimension_numbers<[1], [0], [0], [1], [0, 0, 1, 1], [], []>} : vector<64x64xbf16>, vector<64x32xbf16>, vector<64x32xf32> -> vector<64x32xf32>
    %cst_23 = arith.constant 0.000000e+00 : f32
    %36 = vector.broadcast %cst_23 : f32 to vector<64x32xf32>
    %37 = arith.maximumf %35, %36 : vector<64x32xf32>
    %c0_24 = arith.constant 0 : index
    %c0_25 = arith.constant 0 : index
    %38 = vector.load %arg9[%c0_24, %c0_25] : memref<32x16xf32, #tpu.memory_space<vmem>>, vector<32x16xf32>
    %39 = arith.truncf %38 : vector<32x16xf32> to vector<32x16xbf16>
    %c0_26 = arith.constant 0 : index
    %c0_27 = arith.constant 0 : index
    %40 = vector.load %arg10[%c0_26, %c0_27] : memref<16x16xf32, #tpu.memory_space<vmem>>, vector<16x16xf32>
    %41 = arith.truncf %40 : vector<16x16xf32> to vector<16x16xbf16>
    %c0_28 = arith.constant 0 : index
    %c0_29 = arith.constant 0 : index
    %42 = vector.load %arg11[%c0_28, %c0_29] : memref<32x16xf32, #tpu.memory_space<vmem>>, vector<32x16xf32>
    %43 = arith.truncf %42 : vector<32x16xf32> to vector<32x16xbf16>
    %c0_30 = arith.constant 0 : index
    %c0_31 = arith.constant 0 : index
    %44 = vector.load %arg13[%c0_30, %c0_31] : memref<16x8xf32, #tpu.memory_space<vmem>>, vector<16x8xf32>
    %45 = arith.truncf %44 : vector<16x8xf32> to vector<16x8xbf16>
    %46 = arith.truncf %37 : vector<64x32xf32> to vector<64x32xbf16>
    %cst_32 = arith.constant dense<0.000000e+00> : vector<64x16xf32>
    %47 = tpu.matmul %46, %43, %cst_32 {dimension_numbers = #tpu.dot_dimension_numbers<[1], [0], [0], [1], [0, 0, 1, 1], [], []>} : vector<64x32xbf16>, vector<32x16xbf16>, vector<64x16xf32> -> vector<64x16xf32>
    %cst_33 = arith.constant dense<0.000000e+00> : vector<64x32xf32>
    %48 = tpu.matmul %7, %46, %cst_33 {dimension_numbers = #tpu.dot_dimension_numbers<[1], [0], [0], [1], [0, 0, 1, 1], [], []>} : vector<64x64xbf16>, vector<64x32xbf16>, vector<64x32xf32> -> vector<64x32xf32>
    %49 = arith.truncf %48 : vector<64x32xf32> to vector<64x32xbf16>
    %cst_34 = arith.constant dense<0.000000e+00> : vector<64x16xf32>
    %50 = tpu.matmul %49, %39, %cst_34 {dimension_numbers = #tpu.dot_dimension_numbers<[1], [0], [0], [1], [0, 0, 1, 1], [], []>} : vector<64x32xbf16>, vector<32x16xbf16>, vector<64x16xf32> -> vector<64x16xf32>
    %51 = arith.addf %50, %47 : vector<64x16xf32>
    %c0_35 = arith.constant 0 : index
    %c0_36 = arith.constant 0 : index
    %52 = vector.load %arg12[%c0_35, %c0_36] : memref<2x16xf32, #tpu.memory_space<vmem>>, vector<1x16xf32>
    %53 = vector.broadcast %52 : vector<1x16xf32> to vector<64x16xf32>
    %54 = arith.addf %51, %53 : vector<64x16xf32>
    %55 = arith.truncf %54 : vector<64x16xf32> to vector<64x16xbf16>
    %cst_37 = arith.constant dense<0.000000e+00> : vector<64x16xf32>
    %56 = tpu.matmul %7, %55, %cst_37 {dimension_numbers = #tpu.dot_dimension_numbers<[1], [0], [0], [1], [0, 0, 1, 1], [], []>} : vector<64x64xbf16>, vector<64x16xbf16>, vector<64x16xf32> -> vector<64x16xf32>
    %57 = arith.truncf %56 : vector<64x16xf32> to vector<64x16xbf16>
    %cst_38 = arith.constant dense<0.000000e+00> : vector<64x16xf32>
    %58 = tpu.matmul %57, %41, %cst_38 {dimension_numbers = #tpu.dot_dimension_numbers<[1], [0], [0], [1], [0, 0, 1, 1], [], []>} : vector<64x16xbf16>, vector<16x16xbf16>, vector<64x16xf32> -> vector<64x16xf32>
    %59 = arith.addf %58, %47 : vector<64x16xf32>
    %c1_39 = arith.constant 1 : index
    %c0_40 = arith.constant 0 : index
    %60 = vector.load %arg12[%c1_39, %c0_40] : memref<2x16xf32, #tpu.memory_space<vmem>>, vector<1x16xf32>
    %61 = vector.broadcast %60 : vector<1x16xf32> to vector<64x16xf32>
    %62 = arith.addf %59, %61 : vector<64x16xf32>
    %63 = arith.truncf %62 : vector<64x16xf32> to vector<64x16xbf16>
    %cst_41 = arith.constant dense<0.000000e+00> : vector<64x8xf32>
    %64 = tpu.matmul %63, %45, %cst_41 {dimension_numbers = #tpu.dot_dimension_numbers<[1], [0], [0], [1], [0, 0, 1, 1], [], []>} : vector<64x16xbf16>, vector<16x8xbf16>, vector<64x8xf32> -> vector<64x8xf32>
    %c0_42 = arith.constant 0 : index
    %c0_43 = arith.constant 0 : index
    %65 = vector.load %arg14[%c0_42, %c0_43] : memref<64x8xf32, #tpu.memory_space<vmem>>, vector<64x8xf32>
    tpu.vector_store %arg14[%c0_42, %c0_43], %64 {strides = array<i32>} : memref<64x8xf32, #tpu.memory_space<vmem>>, vector<64x8xf32>,
    return
  }
}

</mosaic_0001>

<bundles_post_ra>
// kernel: arma4nc_forward.1
= control target key start
LH: loop header
LB: loop body
LE: loop exit
PB: predicated region body
PF: predicated region fallthrough
CT: control target
= control target key end

     0   :  { %v801_v0 = vmov 0   ;;  %vm212_vm0 = vcmask 523264   ;;  %vm170_vm1 = vcmask 130048   ;;  %vm472_vm2 = vcmask 261120   ;;  %s1236_s1 = inlined_call_operand.vmem [shape: f32[64,1], index: 1, kind: input, shape index: {}]   ;;  %s1237_s3 = inlined_call_operand.vmem [shape: f32[64,16], index: 3, kind: input, shape index: {}]   ;;  %s1238_s2 = inlined_call_operand.vmem [shape: f32[1,64], index: 2, kind: input, shape index: {}]   ;;  %s1239_s0 = inlined_call_operand.vmem [shape: f32[64,64], index: 0, kind: input, shape index: {}]   ;;  %s1240_s6 = inlined_call_operand.vmem [shape: f32[16,64], index: 6, kind: input, shape index: {}]   ;;  %s1241_s4 = inlined_call_operand.vmem [shape: f32[16,64], index: 4, kind: input, shape index: {}]   ;;  %s1242_s7 = inlined_call_operand.vmem [shape: f32[2,64], index: 7, kind: input, shape index: {}]   ;;  %s1243_s5 = inlined_call_operand.vmem [shape: f32[64,64], index: 5, kind: input, shape index: {}]   ;;  %s1244_s8 = inlined_call_operand.vmem [shape: f32[64,32], index: 8, kind: input, shape index: {}]   ;;  %s1245_s11 = inlined_call_operand.vmem [shape: f32[32,16], index: 11, kind: input, shape index: {}]   ;;  %s1246_s12 = inlined_call_operand.vmem [shape: f32[2,16], index: 12, kind: input, shape index: {}]   ;;  %s1247_s9 = inlined_call_operand.vmem [shape: f32[32,16], index: 9, kind: input, shape index: {}]   ;;  %s1248_s10 = inlined_call_operand.vmem [shape: f32[16,16], index: 10, kind: input, shape index: {}]   ;;  %s1249_s13 = inlined_call_operand.vmem [shape: f32[16,8], index: 13, kind: input, shape index: {}]   ;;  %s1250_s14 = inlined_call_operand.vmem [shape: f32[64,8], index: 14, kind: output, shape index: {}]  }
   0x1   :  { %794 = vset.pattern.permute.xlu1 %v801_v0  ;;  %793 = vset.pattern.permute.xlu0 %v801_v0  ;;  %v50_v1 = vld [vmem:[%s1236_s1 + $0x10] sm:$0xff]  ;;  %v48_v2 = vld [vmem:[%s1236_s1] sm:$0xff]  ;;  %v135_v5 = vld [vmem:[%s1237_s3 + $0x38] sm:$0xff]  ;;  %vm731_vm3 = vcmask 64512  }
   0x2   :  { %76 = vperm.xlu1 %794, %v50_v1   ;;  %66 = vperm.xlu0 %793, %v48_v2   ;;  %v52_v3 = vld [vmem:[%s1236_s1 + $0x20] sm:$0xff]  ;;  %v134_v4 = vld [vmem:[%s1237_s3 + $0x30] sm:$0xff]  ;;  %v51_v7 = vld [vmem:[%s1236_s1 + $0x18] sm:$0xff] }
   0x3   :  { %795 = vset.pattern.permute.xlu2 %v801_v0  ;;  %v892_v6 = vpack.c.bf16 %v135_v5, %v134_v4  ;;  %v49_v8 = vld [vmem:[%s1236_s1 + $0x8] sm:$0xff]  ;;  %v55_v10 = vld [vmem:[%s1236_s1 + $0x38] sm:$0xff]  ;;  %v54_v11 = vld [vmem:[%s1236_s1 + $0x30] sm:$0xff] }
   0x4   :  { %86 = vperm.xlu2 %795, %v52_v3   ;;  %v53_v9 = vld [vmem:[%s1236_s1 + $0x28] sm:$0xff]  ;;  %v132_v12 = vld [vmem:[%s1237_s3 + $0x20] sm:$0xff]  ;;  %v130_v15 = vld [vmem:[%s1237_s3 + $0x10] sm:$0xff] }
   0x5   :  { %229 = vmatpush.bf16.msra.mxu1 %v892_v6  ;;  %v133_v13 = vld [vmem:[%s1237_s3 + $0x28] sm:$0xff]  ;;  %v131_v16 = vld [vmem:[%s1237_s3 + $0x18] sm:$0xff]  ;;  %v128_v18 = vld [vmem:[%s1237_s3] sm:$0xff] }
   0x6   :  { %v916_v14 = vpack.c.bf16 %v133_v13, %v132_v12  ;;  %v167_v17 = vpack.c.bf16 %v131_v16, %v130_v15  ;;  %v129_v19 = vld [vmem:[%s1237_s3 + $0x8] sm:$0xff]  ;;  %v56_v22 = vld [vmem:[%s1239_s0] sm:$0xff]  ;;  %v58_v32 = vld [vmem:[%s1239_s0 + $0x10] sm:$0xff] }
   0x7   :  { %v166_v20 = vpack.c.bf16 %v129_v19, %v128_v18  ;;  %v57_v23 = vld [vmem:[%s1239_s0 + $0x8] sm:$0xff]  ;;  %v796_v24 = vld [vmem:[%s1238_s2] ss:$0 sm:$0xff]  ;;  %v59_v33 = vld [vmem:[%s1239_s0 + $0x18] sm:$0xff] }
   0x8   :  { %v60_v41 = vld [vmem:[%s1239_s0 + $0x20] sm:$0xff]  ;;  %v61_v43 = vld [vmem:[%s1239_s0 + $0x28] sm:$0xff]  ;;  %v63_v50 = vld [vmem:[%s1239_s0 + $0x38] sm:$0xff] }
   0x9   :  { %230 = vmatpush.bf16.msra.mxu1 %v916_v14  ;;  %v62_v52 = vld [vmem:[%s1239_s0 + $0x30] sm:$0xff]  ;;  %v151_v58 = vld [vmem:[%s1240_s6] sm:$0xff]  ;;  %v152_v59 = vld [vmem:[%s1240_s6 + $0x8] sm:$0xff] }
   0xa   :  { %81 = vperm.xlu1 %794, %v51_v7   ;;  %71 = vperm.xlu0 %793, %v49_v8   ;;  %v153_v60 = vpack.c.bf16 %v152_v59, %v151_v58  ;;  %v136_v61 = vld [vmem:[%s1241_s4] sm:$0xff]  ;;  %v137_v62 = vld [vmem:[%s1241_s4 + $0x8] sm:$0xff]  ;;  %v141_v59 = vld [vmem:[%s1243_s5 + $0x10] sm:$0xff] }
   0xb   :  { %v138_v63 = vpack.c.bf16 %v137_v62, %v136_v61  ;;  %v139_v62 = vld [vmem:[%s1243_s5] sm:$0xff] }
   0xc   :  { %91 = vperm.xlu2 %795, %v53_v9   ;;  %190 = vmatpush.bf16.msra.mxu0 %v153_v60  ;;  %v142_v60 = vld [vmem:[%s1243_s5 + $0x18] sm:$0xff] }
   0xd   :  { %231 = vmatpush.bf16.msra.mxu1 %v167_v17  ;;  %277 = vmatpush.bf16.msra.mxu2 %v138_v63  ;;  %v148_v61 = vpack.c.bf16 %v142_v60, %v141_v59  ;;  %v140_v63 = vld [vmem:[%s1243_s5 + $0x8] sm:$0xff] }
   0xf   :  { %744 = vmatmul.msk.bf16.vlgmr.msra.gmra.mxu0 %vm170_vm1, %v166_v20 }
  0x11   :  { %232 = vmatpush.bf16.msra.mxu1 %v166_v20 }
  0x12   :  { %101 = vperm.xlu1 %794, %v55_v10   ;;  %96 = vperm.xlu0 %793, %v54_v11  }
  0x1f   :  { %745 = vmatmul.msk.bf16.gmra.mxu0 %vm170_vm1, %v167_v17 }
  0x2f   :  { %746 = vmatmul.msk.bf16.gmra.mxu0 %vm170_vm1, %v916_v14 }
  0x3f   :  { %747 = vmatmul.msk.bf16.gmra.mxu0 %vm170_vm1, %v892_v6 }
  0x5e   :  { %v87_v37 = vpop.permute.xlu2 %86 }
  0x5f   :  { %v108_v44 = vmul.f32 %v87_v37, %v60_v41 }
  0x61   :  { %v120_v46 = vmul.f32 %v796_v24, %v108_v44 }
  0x66   :  { %v92_v42 = vpop.permute.xlu2 %91 }
  0x67   :  { %v109_v45 = vmul.f32 %v92_v42, %v61_v43 }
  0x69   :  { %v121_v47 = vmul.f32 %v796_v24, %v109_v45 }
  0x6b   :  { %v960_v48 = vpack.c.bf16 %v121_v47, %v120_v46 }
  0x74   :  { %v67_v21 = vpop.permute.xlu0 %66  ;;  %v77_v28 = vpop.permute.xlu1 %76 }
  0x75   :  { %v104_v25 = vmul.f32 %v67_v21, %v56_v22  ;;  %v106_v35 = vmul.f32 %v77_v28, %v58_v32 }
  0x77   :  { %v116_v29 = vmul.f32 %v796_v24, %v104_v25  ;;  %v118_v38 = vmul.f32 %v796_v24, %v106_v35 }
  0x7c   :  { %v72_v26 = vpop.permute.xlu0 %71  ;;  %v82_v34 = vpop.permute.xlu1 %81 }
  0x7d   :  { %v105_v27 = vmul.f32 %v72_v26, %v57_v23  ;;  %v107_v36 = vmul.f32 %v82_v34, %v59_v33 }
  0x7f   :  { %v117_v30 = vmul.f32 %v796_v24, %v105_v27  ;;  %v119_v39 = vmul.f32 %v796_v24, %v107_v36 }
  0x81   :  { %v940_v31 = vpack.c.bf16 %v117_v30, %v116_v29  ;;  %v950_v40 = vpack.c.bf16 %v119_v39, %v118_v38  ;;  %v797_v29 = vld [vmem:[%s1242_s7] ss:$0 sm:$0xff] }
  0x83   :  { %748 = vmatmul.msk.bf16.vlgmr.msra.gmra.mxu1 %vm212_vm0, %v940_v31 }
  0x84   :  { %v102_v49 = vpop.permute.xlu1 %101  ;;  %v97_v51 = vpop.permute.xlu0 %96 }
  0x85   :  { %v111_v53 = vmul.f32 %v102_v49, %v63_v50  ;;  %v110_v54 = vmul.f32 %v97_v51, %v62_v52  ;;  %v145_v52 = vld [vmem:[%s1243_s5 + $0x30] sm:$0xff] }
  0x87   :  { %v123_v55 = vmul.f32 %v796_v24, %v111_v53  ;;  %v122_v56 = vmul.f32 %v796_v24, %v110_v54  ;;  %v146_v53 = vld [vmem:[%s1243_s5 + $0x38] sm:$0xff] }
  0x88   :  { %v150_v54 = vpack.c.bf16 %v146_v53, %v145_v52 }
  0x89   :  { %v970_v57 = vpack.c.bf16 %v123_v55, %v122_v56  ;;  %v143_v55 = vld [vmem:[%s1243_s5 + $0x20] sm:$0xff]  ;;  %v144_v56 = vld [vmem:[%s1243_s5 + $0x28] sm:$0xff] }
  0x8a   :  { %362 = vmatpush.bf16.msrb.mxu0 %v150_v54  ;;  %v149_v58 = vpack.c.bf16 %v144_v56, %v143_v55 }
  0x8c   :  { %v996_v13 = vpop.f32.mrf.mxu0 }
  0x8e   :  { %363 = vmatpush.bf16.msrb.mxu0 %v149_v58 }
  0x92   :  { %364 = vmatpush.bf16.msrb.mxu0 %v148_v61 }
  0x93   :  { %749 = vmatmul.msk.bf16.gmra.mxu1 %vm212_vm0, %v950_v40 }
  0x94   :  { %v998_v14 = vpop.f32.mrf.mxu0 }
  0x9c   :  { %v1000_v16 = vpop.f32.mrf.mxu0 }
  0xa3   :  { %750 = vmatmul.msk.bf16.gmra.mxu1 %vm212_vm0, %v960_v48 }
  0xa4   :  { %v1002_v17 = vpop.f32.mrf.mxu0 }
  0xac   :  { %v1004_v20 = vpop.f32.mrf.mxu0 }
  0xb3   :  { %751 = vmatmul.msk.bf16.gmra.mxu1 %vm212_vm0, %v970_v57 }
  0xb4   :  { %v1006_v22 = vpop.f32.mrf.mxu0 }
  0xbc   :  { %v1008_v24 = vpop.f32.mrf.mxu0 }
  0xc4   :  { %v1011_v27 = vpop.f32.mrf.mxu0 }
 0x100   :  { %v234_v0 = vpop.f32.mrf.mxu1 }
 0x108   :  { %v236_v1 = vpop.f32.mrf.mxu1 }
 0x109   :  { %v254_v2 = vpack.c.bf16 %v236_v1, %v234_v0  ;;  %v147_v0 = vpack.c.bf16 %v140_v63, %v139_v62 }
 0x10b   :  { %752 = vmatmul.msk.bf16.vlgmr.msra.gmra.mxu2 %vm170_vm1, %v254_v2  ;;  %365 = vmatpush.bf16.msrb.mxu0 %v147_v0 }
 0x110   :  { %v239_v3 = vpop.f32.mrf.mxu1 }
 0x118   :  { %v241_v4 = vpop.f32.mrf.mxu1 }
 0x119   :  { %v255_v5 = vpack.c.bf16 %v241_v4, %v239_v3 }
 0x11b   :  { %753 = vmatmul.msk.bf16.gmra.mxu2 %vm170_vm1, %v255_v5 }
 0x120   :  { %v244_v7 = vpop.f32.mrf.mxu1 }
 0x128   :  { %v246_v8 = vpop.f32.mrf.mxu1 }
 0x129   :  { %v256_v9 = vpack.c.bf16 %v246_v8, %v244_v7 }
 0x12b   :  { %754 = vmatmul.msk.bf16.gmra.mxu2 %vm170_vm1, %v256_v9 }
 0x130   :  { %v249_v10 = vpop.f32.mrf.mxu1 }
 0x138   :  { %v251_v11 = vpop.f32.mrf.mxu1 }
 0x139   :  { %v257_v12 = vpack.c.bf16 %v251_v11, %v249_v10 }
 0x13b   :  { %755 = vmatmul.msk.bf16.gmra.mxu2 %vm170_vm1, %v257_v12 }
 0x18e   :  { %v279_v15 = vpop.f32.mrf.mxu2 }
 0x18f   :  { %v280_v45 = vadd.f32 %v279_v15, %v996_v13 }
 0x191   :  { %v301_v50 = vadd.f32 %v797_v29, %v280_v45 }
 0x196   :  { %v281_v6 = vpop.f32.mrf.mxu2 }
 0x197   :  { %v282_v42 = vadd.f32 %v281_v6, %v998_v14  ;;  %v160_v6 = vld [vmem:[%s1244_s8 + $0x30] sm:$0xff] }
 0x199   :  { %v302_v47 = vadd.f32 %v797_v29, %v282_v42 }
 0x19b   :  { %v309_v51 = vpack.c.bf16 %v302_v47, %v301_v50 }
 0x19e   :  { %v284_v18 = vpop.f32.mrf.mxu2 }
 0x19f   :  { %v285_v39 = vadd.f32 %v284_v18, %v1000_v16  ;;  %v161_v18 = vld [vmem:[%s1244_s8 + $0x38] sm:$0xff] }
 0x1a1   :  { %v303_v46 = vadd.f32 %v797_v29, %v285_v39 }
 0x1a6   :  { %v286_v19 = vpop.f32.mrf.mxu2 }
 0x1a7   :  { %v287_v36 = vadd.f32 %v286_v19, %v1002_v17  ;;  %v165_v19 = vpack.c.bf16 %v161_v18, %v160_v6 }
 0x1a9   :  { %v304_v43 = vadd.f32 %v797_v29, %v287_v36  ;;  %417 = vmatpush.bf16.msrb.mxu2 %v165_v19  ;;  %v798_v36 = vld [vmem:[%s1242_s7 + $0x1] ss:$0 sm:$0xff] }
 0x1ab   :  { %v310_v49 = vpack.c.bf16 %v304_v43, %v303_v46 }
 0x1ae   :  { %v289_v21 = vpop.f32.mrf.mxu2 }
 0x1af   :  { %v290_v33 = vadd.f32 %v289_v21, %v1004_v20  ;;  %v158_v21 = vld [vmem:[%s1244_s8 + $0x20] sm:$0xff] }
 0x1b1   :  { %v305_v41 = vadd.f32 %v797_v29, %v290_v33 }
 0x1b6   :  { %v291_v23 = vpop.f32.mrf.mxu2 }
 0x1b7   :  { %v292_v30 = vadd.f32 %v291_v23, %v1006_v22  ;;  %v159_v23 = vld [vmem:[%s1244_s8 + $0x28] sm:$0xff] }
 0x1b9   :  { %v306_v37 = vadd.f32 %v797_v29, %v292_v30  ;;  %v154_v30 = vld [vmem:[%s1244_s8] sm:$0xff] }
 0x1bb   :  { %v311_v44 = vpack.c.bf16 %v306_v37, %v305_v41 }
 0x1be   :  { %v294_v25 = vpop.f32.mrf.mxu2 }
 0x1bf   :  { %v295_v26 = vadd.f32 %v294_v25, %v1008_v24  ;;  %v164_v25 = vpack.c.bf16 %v159_v23, %v158_v21 }
 0x1c1   :  { %v307_v34 = vadd.f32 %v797_v29, %v295_v26  ;;  %418 = vmatpush.bf16.msrb.mxu2 %v164_v25  ;;  %v156_v26 = vld [vmem:[%s1244_s8 + $0x10] sm:$0xff] }
 0x1c6   :  { %v296_v28 = vpop.f32.mrf.mxu2 }
 0x1c7   :  { %v297_v32 = vadd.f32 %v296_v28, %v1011_v27  ;;  %v157_v28 = vld [vmem:[%s1244_s8 + $0x18] sm:$0xff] }
 0x1c9   :  { %v308_v35 = vadd.f32 %v797_v29, %v297_v32  ;;  %v163_v29 = vpack.c.bf16 %v157_v28, %v156_v26  ;;  %v155_v32 = vld [vmem:[%s1244_s8 + $0x8] sm:$0xff]  ;;  %v452_v28 = vld [vmem:[%s1247_s9 + $0x10] sm:$0xff] }
 0x1ca   :  { %v162_v33 = vpack.c.bf16 %v155_v32, %v154_v30  ;;  %v450_v32 = vld [vmem:[%s1247_s9] sm:$0xff] }
 0x1cb   :  { %v312_v38 = vpack.c.bf16 %v308_v35, %v307_v34  ;;  %419 = vmatpush.bf16.msrb.mxu2 %v163_v29  ;;  %v453_v29 = vld [vmem:[%s1247_s9 + $0x18] sm:$0xff] }
 0x1cc   :  { %v455_v30 = vpack.c.bf16 %v453_v29, %v452_v28 }
 0x1cd   :  { %317 = vmatpush.bf16.msra.mxu3 %v312_v38 }
 0x1ce   :  { %565 = vmatpush.bf16.msra.mxu0 %v455_v30 }
 0x1cf   :  { %420 = vmatpush.bf16.msrb.mxu2 %v162_v33  ;;  %v451_v33 = vld [vmem:[%s1247_s9 + $0x8] sm:$0xff] }
 0x1d1   :  { %318 = vmatpush.bf16.msra.mxu3 %v311_v44 }
 0x1d5   :  { %319 = vmatpush.bf16.msra.mxu3 %v310_v49 }
 0x1d9   :  { %320 = vmatpush.bf16.msra.mxu3 %v309_v51 }
 0x1dc   :  { %756 = vmatmul.msk.bf16.vlgmr.msra.gmra.mxu3 %vm212_vm0, %v940_v31 }
 0x1ec   :  { %757 = vmatmul.msk.bf16.gmra.mxu3 %vm212_vm0, %v950_v40 }
 0x1fc   :  { %758 = vmatmul.msk.bf16.gmra.mxu3 %vm212_vm0, %v960_v48 }
 0x20c   :  { %759 = vmatmul.msk.bf16.gmra.mxu3 %vm212_vm0, %v970_v57 }
 0x25f   :  { %v322_v1 = vpop.f32.mrf.mxu3 }
 0x267   :  { %v324_v2 = vpop.f32.mrf.mxu3 }
 0x268   :  { %v342_v3 = vpack.c.bf16 %v324_v2, %v322_v1 }
 0x26a   :  { %760 = vmatmul.msk.bf16.vlgmr.msrb.gmra.mxu0 %vm212_vm0, %v342_v3 }
 0x26f   :  { %v327_v4 = vpop.f32.mrf.mxu3 }
 0x277   :  { %v329_v5 = vpop.f32.mrf.mxu3 }
 0x278   :  { %v343_v7 = vpack.c.bf16 %v329_v5, %v327_v4 }
 0x27a   :  { %761 = vmatmul.msk.bf16.gmra.mxu0 %vm212_vm0, %v343_v7 }
 0x27f   :  { %v332_v8 = vpop.f32.mrf.mxu3 }
 0x287   :  { %v334_v9 = vpop.f32.mrf.mxu3 }
 0x288   :  { %v344_v10 = vpack.c.bf16 %v334_v9, %v332_v8 }
 0x28a   :  { %762 = vmatmul.msk.bf16.gmra.mxu0 %vm212_vm0, %v344_v10 }
 0x28f   :  { %v337_v11 = vpop.f32.mrf.mxu3 }
 0x297   :  { %v339_v12 = vpop.f32.mrf.mxu3 }
 0x298   :  { %v345_v15 = vpack.c.bf16 %v339_v12, %v337_v11 }
 0x29a   :  { %763 = vmatmul.msk.bf16.gmra.mxu0 %vm212_vm0, %v345_v15 }
 0x2e7   :  { %v367_v34 = vpop.f32.mrf.mxu0 }
 0x2e8   :  { %v368_v35 = vadd.f32 %v367_v34, %v996_v13  ;;  %v454_v34 = vpack.c.bf16 %v451_v33, %v450_v32 }
 0x2ea   :  { %v389_v39 = vadd.f32 %v798_v36, %v368_v35  ;;  %566 = vmatpush.bf16.msra.mxu0 %v454_v34 }
 0x2ef   :  { %v369_v37 = vpop.f32.mrf.mxu0 }
 0x2f0   :  { %v370_v38 = vadd.f32 %v369_v37, %v998_v14 }
 0x2f2   :  { %v390_v41 = vadd.f32 %v798_v36, %v370_v38 }
 0x2f4   :  { %v397_v42 = vpack.c.bf16 %v390_v41, %v389_v39 }
 0x2f6   :  { %764 = vmatmul.msk.bf16.vlgmr.msrb.gmra.mxu2 %vm212_vm0, %v397_v42 }
 0x2f7   :  { %v372_v43 = vpop.f32.mrf.mxu0 }
 0x2f8   :  { %v373_v44 = vadd.f32 %v372_v43, %v1000_v16 }
 0x2fa   :  { %v391_v47 = vadd.f32 %v798_v36, %v373_v44 }
 0x2ff   :  { %v374_v45 = vpop.f32.mrf.mxu0 }
 0x300   :  { %v375_v46 = vadd.f32 %v374_v45, %v1002_v17 }
 0x302   :  { %v392_v13 = vadd.f32 %v798_v36, %v375_v46 }
 0x304   :  { %v398_v49 = vpack.c.bf16 %v392_v13, %v391_v47 }
 0x306   :  { %765 = vmatmul.msk.bf16.gmra.mxu2 %vm212_vm0, %v398_v49 }
 0x307   :  { %v377_v50 = vpop.f32.mrf.mxu0 }
 0x308   :  { %v378_v51 = vadd.f32 %v377_v50, %v1004_v20  ;;  %v461_v20 = vld [vmem:[%s1245_s11 + $0x10] sm:$0xff] }
 0x30a   :  { %v393_v53 = vadd.f32 %v798_v36, %v378_v51 }
 0x30f   :  { %v379_v14 = vpop.f32.mrf.mxu0 }
 0x310   :  { %v380_v52 = vadd.f32 %v379_v14, %v1006_v22  ;;  %v462_v22 = vld [vmem:[%s1245_s11 + $0x18] sm:$0xff] }
 0x311   :  { %v464_v62 = vpack.c.bf16 %v462_v22, %v461_v20  ;;  %v799_v22 = vld [vmem:[%s1246_s12] ss:$0 sm:$0xff] }
 0x312   :  { %v394_v54 = vadd.f32 %v798_v36, %v380_v52 }
 0x313   :  { %491 = vmatpush.bf16.msrb.mxu1 %v464_v62 }
 0x314   :  { %v399_v55 = vpack.c.bf16 %v394_v54, %v393_v53 }
 0x316   :  { %766 = vmatmul.msk.bf16.gmra.mxu2 %vm212_vm0, %v399_v55 }
 0x317   :  { %v382_v16 = vpop.f32.mrf.mxu0 }
 0x318   :  { %v383_v56 = vadd.f32 %v382_v16, %v1008_v24  ;;  %v459_v24 = vld [vmem:[%s1245_s11] sm:$0xff] }
 0x31a   :  { %v395_v59 = vadd.f32 %v798_v36, %v383_v56 }
 0x31f   :  { %v384_v17 = vpop.f32.mrf.mxu0 }
 0x320   :  { %v385_v58 = vadd.f32 %v384_v17, %v1011_v27  ;;  %v460_v27 = vld [vmem:[%s1245_s11 + $0x8] sm:$0xff] }
 0x321   :  { %v463_v63 = vpack.c.bf16 %v460_v27, %v459_v24 }
 0x322   :  { %v396_v60 = vadd.f32 %v798_v36, %v385_v58 }
 0x323   :  { %492 = vmatpush.bf16.msrb.mxu1 %v463_v63 }
 0x324   :  { %v400_v61 = vpack.c.bf16 %v396_v60, %v395_v59 }
 0x326   :  { %767 = vmatmul.msk.bf16.gmra.mxu2 %vm212_vm0, %v400_v61 }
 0x379   :  { %v422_v0 = vpop.f32.mrf.mxu2 }
 0x37a   :  { %v442_v2 = vmax.f32 %v422_v0, 0.0 }
 0x381   :  { %v424_v1 = vpop.f32.mrf.mxu2 }
 0x382   :  { %v443_v3 = vmax.f32 %v424_v1, 0.0 }
 0x384   :  { %v468_v4 = vpack.c.bf16 %v443_v3, %v442_v2 }
 0x386   :  { %768 = vmatmul.msk.bf16.vlgmr.msrb.gmra.mxu1 %vm472_vm2, %v468_v4 }
 0x389   :  { %v427_v5 = vpop.f32.mrf.mxu2 }
 0x38a   :  { %v444_v8 = vmax.f32 %v427_v5, 0.0 }
 0x391   :  { %v429_v7 = vpop.f32.mrf.mxu2 }
 0x392   :  { %v445_v9 = vmax.f32 %v429_v7, 0.0 }
 0x394   :  { %v469_v10 = vpack.c.bf16 %v445_v9, %v444_v8 }
 0x396   :  { %769 = vmatmul.msk.bf16.gmra.mxu1 %vm472_vm2, %v469_v10 }
 0x399   :  { %v432_v11 = vpop.f32.mrf.mxu2 }
 0x39a   :  { %v446_v15 = vmax.f32 %v432_v11, 0.0 }
 0x3a1   :  { %v434_v12 = vpop.f32.mrf.mxu2 }
 0x3a2   :  { %v447_v6 = vmax.f32 %v434_v12, 0.0 }
 0x3a4   :  { %v470_v18 = vpack.c.bf16 %v447_v6, %v446_v15 }
 0x3a6   :  { %770 = vmatmul.msk.bf16.gmra.mxu1 %vm472_vm2, %v470_v18 }
 0x3a9   :  { %v437_v19 = vpop.f32.mrf.mxu2 }
 0x3aa   :  { %v448_v23 = vmax.f32 %v437_v19, 0.0  ;;  %v456_v19 = vld [vmem:[%s1248_s10] sm:$0xff] }
 0x3b1   :  { %v439_v21 = vpop.f32.mrf.mxu2 }
 0x3b2   :  { %v449_v25 = vmax.f32 %v439_v21, 0.0  ;;  %v457_v21 = vld [vmem:[%s1248_s10 + $0x8] sm:$0xff] }
 0x3b4   :  { %v471_v26 = vpack.c.bf16 %v449_v25, %v448_v23  ;;  %v458_v23 = vpack.c.bf16 %v457_v21, %v456_v19 }
 0x3b6   :  { %771 = vmatmul.msk.bf16.gmra.mxu1 %vm472_vm2, %v471_v26  ;;  %518 = vmatpush.bf16.msrb.mxu3 %v471_v26 }
 0x3b7   :  { %654 = vmatpush.bf16.msra.mxu1 %v458_v23 }
 0x3ba   :  { %519 = vmatpush.bf16.msrb.mxu3 %v470_v18 }
 0x3be   :  { %520 = vmatpush.bf16.msrb.mxu3 %v469_v10 }
 0x3c2   :  { %521 = vmatpush.bf16.msrb.mxu3 %v468_v4 }
 0x3c5   :  { %772 = vmatmul.msk.bf16.vlgmr.msrb.gmra.mxu3 %vm212_vm0, %v940_v31 }
 0x3d5   :  { %773 = vmatmul.msk.bf16.gmra.mxu3 %vm212_vm0, %v950_v40 }
 0x3e5   :  { %774 = vmatmul.msk.bf16.gmra.mxu3 %vm212_vm0, %v960_v48 }
 0x3f5   :  { %775 = vmatmul.msk.bf16.gmra.mxu3 %vm212_vm0, %v970_v57 }
 0x403   :  { %v1138_v13 = vpop.f32.mrf.mxu1 }
 0x40b   :  { %v1140_v49 = vpop.f32.mrf.mxu1 }
 0x413   :  { %v1142_v51 = vpop.f32.mrf.mxu1 }
 0x41b   :  { %v1144_v52 = vpop.f32.mrf.mxu1 }
 0x423   :  { %v1146_v55 = vpop.f32.mrf.mxu1 }
 0x42b   :  { %v1148_v56 = vpop.f32.mrf.mxu1 }
 0x433   :  { %v1150_v58 = vpop.f32.mrf.mxu1 }
 0x43b   :  { %v1153_v61 = vpop.f32.mrf.mxu1 }
 0x448   :  { %v523_v35 = vpop.f32.mrf.mxu3 }
 0x450   :  { %v525_v36 = vpop.f32.mrf.mxu3 }
 0x451   :  { %v543_v37 = vpack.c.bf16 %v525_v36, %v523_v35  ;;  %v466_v36 = vld [vmem:[%s1249_s13 + $0x8] sm:$0xff] }
 0x453   :  { %776 = vmatmul.msk.bf16.vlgmr.msra.gmra.mxu0 %vm472_vm2, %v543_v37 }
 0x458   :  { %v528_v38 = vpop.f32.mrf.mxu3 }
 0x460   :  { %v530_v39 = vpop.f32.mrf.mxu3 }
 0x461   :  { %v544_v41 = vpack.c.bf16 %v530_v39, %v528_v38 }
 0x463   :  { %777 = vmatmul.msk.bf16.gmra.mxu0 %vm472_vm2, %v544_v41  ;;  %v800_v41 = vld [vmem:[%s1246_s12 + $0x1] ss:$0 sm:$0xff] }
 0x468   :  { %v533_v42 = vpop.f32.mrf.mxu3 }
 0x470   :  { %v535_v43 = vpop.f32.mrf.mxu3 }
 0x471   :  { %v545_v44 = vpack.c.bf16 %v535_v43, %v533_v42 }
 0x473   :  { %778 = vmatmul.msk.bf16.gmra.mxu0 %vm472_vm2, %v545_v44 }
 0x478   :  { %v538_v45 = vpop.f32.mrf.mxu3 }
 0x480   :  { %v540_v46 = vpop.f32.mrf.mxu3 }
 0x481   :  { %v546_v47 = vpack.c.bf16 %v540_v46, %v538_v45 }
 0x483   :  { %779 = vmatmul.msk.bf16.gmra.mxu0 %vm472_vm2, %v546_v47 }
 0x4d0   :  { %v568_v50 = vpop.f32.mrf.mxu0 }
 0x4d1   :  { %v569_v10 = vadd.f32 %v568_v50, %v1138_v13 }
 0x4d3   :  { %v590_v6 = vadd.f32 %v799_v22, %v569_v10 }
 0x4d8   :  { %v570_v14 = vpop.f32.mrf.mxu0 }
 0x4d9   :  { %v571_v7 = vadd.f32 %v570_v14, %v1140_v49 }
 0x4db   :  { %v591_v12 = vadd.f32 %v799_v22, %v571_v7 }
 0x4dd   :  { %v598_v18 = vpack.c.bf16 %v591_v12, %v590_v6 }
 0x4e0   :  { %v573_v53 = vpop.f32.mrf.mxu0 }
 0x4e1   :  { %v574_v4 = vadd.f32 %v573_v53, %v1142_v51 }
 0x4e3   :  { %v592_v11 = vadd.f32 %v799_v22, %v574_v4 }
 0x4e8   :  { %v575_v54 = vpop.f32.mrf.mxu0 }
 0x4e9   :  { %v576_v1 = vadd.f32 %v575_v54, %v1144_v52 }
 0x4eb   :  { %v593_v8 = vadd.f32 %v799_v22, %v576_v1 }
 0x4ed   :  { %v599_v15 = vpack.c.bf16 %v593_v8, %v592_v11 }
 0x4f0   :  { %v578_v16 = vpop.f32.mrf.mxu0 }
 0x4f1   :  { %v579_v27 = vadd.f32 %v578_v16, %v1146_v55 }
 0x4f3   :  { %v594_v5 = vadd.f32 %v799_v22, %v579_v27 }
 0x4f8   :  { %v580_v17 = vpop.f32.mrf.mxu0 }
 0x4f9   :  { %v581_v62 = vadd.f32 %v580_v17, %v1148_v56 }
 0x4fb   :  { %v595_v2 = vadd.f32 %v799_v22, %v581_v62 }
 0x4fd   :  { %v600_v9 = vpack.c.bf16 %v595_v2, %v594_v5 }
 0x500   :  { %v583_v59 = vpop.f32.mrf.mxu0 }
 0x501   :  { %v584_v60 = vadd.f32 %v583_v59, %v1150_v58 }
 0x503   :  { %v596_v63 = vadd.f32 %v799_v22, %v584_v60 }
 0x508   :  { %v585_v20 = vpop.f32.mrf.mxu0 }
 0x509   :  { %v586_v24 = vadd.f32 %v585_v20, %v1153_v61 }
 0x50b   :  { %v597_v0 = vadd.f32 %v799_v22, %v586_v24 }
 0x50d   :  { %v601_v3 = vpack.c.bf16 %v597_v0, %v596_v63 }
 0x50f   :  { %606 = vmatpush.bf16.msra.mxu2 %v601_v3 }
 0x513   :  { %607 = vmatpush.bf16.msra.mxu2 %v600_v9 }
 0x517   :  { %608 = vmatpush.bf16.msra.mxu2 %v599_v15 }
 0x51b   :  { %609 = vmatpush.bf16.msra.mxu2 %v598_v18 }
 0x51e   :  { %780 = vmatmul.msk.bf16.vlgmr.msra.gmra.mxu2 %vm212_vm0, %v940_v31 }
 0x52e   :  { %781 = vmatmul.msk.bf16.gmra.mxu2 %vm212_vm0, %v950_v40 }
 0x53e   :  { %782 = vmatmul.msk.bf16.gmra.mxu2 %vm212_vm0, %v960_v48 }
 0x54e   :  { %783 = vmatmul.msk.bf16.gmra.mxu2 %vm212_vm0, %v970_v57  ;;  %v465_v57 = vld [vmem:[%s1249_s13] sm:$0xff] }
 0x54f   :  { %v467_v37 = vpack.c.bf16 %v466_v36, %v465_v57 }
 0x551   :  { %709 = vmatpush.bf16.msra.mxu3 %v467_v37 }
 0x5a1   :  { %v611_v31 = vpop.f32.mrf.mxu2 }
 0x5a9   :  { %v613_v25 = vpop.f32.mrf.mxu2 }
 0x5aa   :  { %v631_v26 = vpack.c.bf16 %v613_v25, %v611_v31 }
 0x5ac   :  { %784 = vmatmul.msk.bf16.vlgmr.msra.gmra.mxu1 %vm170_vm1, %v631_v26 }
 0x5b1   :  { %v616_v40 = vpop.f32.mrf.mxu2 }
 0x5b9   :  { %v618_v28 = vpop.f32.mrf.mxu2 }
 0x5ba   :  { %v632_v29 = vpack.c.bf16 %v618_v28, %v616_v40 }
 0x5bc   :  { %785 = vmatmul.msk.bf16.gmra.mxu1 %vm170_vm1, %v632_v29 }
 0x5c1   :  { %v621_v30 = vpop.f32.mrf.mxu2 }
 0x5c9   :  { %v623_v32 = vpop.f32.mrf.mxu2 }
 0x5ca   :  { %v633_v33 = vpack.c.bf16 %v623_v32, %v621_v30 }
 0x5cc   :  { %786 = vmatmul.msk.bf16.gmra.mxu1 %vm170_vm1, %v633_v33 }
 0x5d1   :  { %v626_v34 = vpop.f32.mrf.mxu2 }
 0x5d9   :  { %v628_v48 = vpop.f32.mrf.mxu2 }
 0x5da   :  { %v634_v35 = vpack.c.bf16 %v628_v48, %v626_v34 }
 0x5dc   :  { %787 = vmatmul.msk.bf16.gmra.mxu1 %vm170_vm1, %v634_v35 }
 0x629   :  { %v656_v38 = vpop.f32.mrf.mxu1 }
 0x62a   :  { %v657_v39 = vadd.f32 %v656_v38, %v1138_v13 }
 0x62c   :  { %v678_v44 = vadd.f32 %v800_v41, %v657_v39 }
 0x631   :  { %v658_v42 = vpop.f32.mrf.mxu1 }
 0x632   :  { %v659_v43 = vadd.f32 %v658_v42, %v1140_v49 }
 0x634   :  { %v679_v45 = vadd.f32 %v800_v41, %v659_v43 }
 0x636   :  { %v686_v46 = vpack.c.bf16 %v679_v45, %v678_v44 }
 0x638   :  { %788 = vmatmul.msk.bf16.vlgmr.msra.gmra.mxu3 %vm170_vm1, %v686_v46 }
 0x639   :  { %v661_v47 = vpop.f32.mrf.mxu1 }
 0x63a   :  { %v662_v50 = vadd.f32 %v661_v47, %v1142_v51 }
 0x63c   :  { %v680_v54 = vadd.f32 %v800_v41, %v662_v50 }
 0x641   :  { %v663_v14 = vpop.f32.mrf.mxu1 }
 0x642   :  { %v664_v53 = vadd.f32 %v663_v14, %v1144_v52 }
 0x644   :  { %v681_v13 = vadd.f32 %v800_v41, %v664_v53 }
 0x646   :  { %v687_v16 = vpack.c.bf16 %v681_v13, %v680_v54 }
 0x648   :  { %789 = vmatmul.msk.bf16.gmra.mxu3 %vm170_vm1, %v687_v16 }
 0x649   :  { %v666_v17 = vpop.f32.mrf.mxu1 }
 0x64a   :  { %v667_v59 = vadd.f32 %v666_v17, %v1146_v55 }
 0x64c   :  { %v682_v20 = vadd.f32 %v800_v41, %v667_v59 }
 0x651   :  { %v668_v49 = vpop.f32.mrf.mxu1 }
 0x652   :  { %v669_v60 = vadd.f32 %v668_v49, %v1148_v56 }
 0x654   :  { %v683_v22 = vadd.f32 %v800_v41, %v669_v60 }
 0x656   :  { %v688_v62 = vpack.c.bf16 %v683_v22, %v682_v20 }
 0x658   :  { %790 = vmatmul.msk.bf16.gmra.mxu3 %vm170_vm1, %v688_v62 }
 0x659   :  { %v671_v51 = vpop.f32.mrf.mxu1 }
 0x65a   :  { %v672_v24 = vadd.f32 %v671_v51, %v1150_v58 }
 0x65c   :  { %v684_v63 = vadd.f32 %v800_v41, %v672_v24 }
 0x661   :  { %v673_v52 = vpop.f32.mrf.mxu1 }
 0x662   :  { %v674_v27 = vadd.f32 %v673_v52, %v1153_v61 }
 0x664   :  { %v685_v0 = vadd.f32 %v800_v41, %v674_v27 }
 0x666   :  { %v689_v1 = vpack.c.bf16 %v685_v0, %v684_v63 }
 0x668   :  { %791 = vmatmul.msk.bf16.gmra.mxu3 %vm170_vm1, %v689_v1 }
 0x6bb   :  { %v711_v55 = vpop.f32.mrf.mxu3 }
 0x6bc   :  { %732 = vst.msk [vmem:[%s1250_s14] sm:$0xff] %vm731_vm3, %v711_v55 }
 0x6c3   :  { %v713_v56 = vpop.f32.mrf.mxu3 }
 0x6c4   :  { %733 = vst.msk [vmem:[%s1250_s14 + $0x8] sm:$0xff] %vm731_vm3, %v713_v56 }
 0x6cb   :  { %v716_v58 = vpop.f32.mrf.mxu3 }
 0x6cc   :  { %734 = vst.msk [vmem:[%s1250_s14 + $0x10] sm:$0xff] %vm731_vm3, %v716_v58 }
 0x6d3   :  { %v718_v61 = vpop.f32.mrf.mxu3 }
 0x6d4   :  { %735 = vst.msk [vmem:[%s1250_s14 + $0x18] sm:$0xff] %vm731_vm3, %v718_v61 }
 0x6db   :  { %v721_v2 = vpop.f32.mrf.mxu3 }
 0x6dc   :  { %736 = vst.msk [vmem:[%s1250_s14 + $0x20] sm:$0xff] %vm731_vm3, %v721_v2 }
 0x6e3   :  { %v723_v3 = vpop.f32.mrf.mxu3 }
 0x6e4   :  { %737 = vst.msk [vmem:[%s1250_s14 + $0x28] sm:$0xff] %vm731_vm3, %v723_v3 }
 0x6eb   :  { %v726_v4 = vpop.f32.mrf.mxu3 }
 0x6ec   :  { %738 = vst.msk [vmem:[%s1250_s14 + $0x30] sm:$0xff] %vm731_vm3, %v726_v4 }
 0x6f3   :  { %v728_v5 = vpop.f32.mrf.mxu3 }
 0x6f4   :  { %739 = vst.msk [vmem:[%s1250_s14 + $0x38] sm:$0xff] %vm731_vm3, %v728_v5 }

</bundles_post_ra>
